<compile_context>
chip_gen: v5e
topology: v5e:2x2
jax: 0.10.0
libtpu: 0.0.40
codegen_flags: <defaults>
</compile_context>

<pallas_src>
import functools

import jax
import jax.numpy as jnp
from jax.experimental import pallas as pl
from jax.experimental.pallas import tpu as pltpu

# hyper-parameters mirroring the module's `h` dict
N = 4               # h['N']  -- divisor used in the forward pass
K = 12              # h['K']  -- number of synthesized filter combinations
L = 8               # h['L']  -- per-filter length
FILTER_SIGMA = 1.0  # h['filter_sigma']

F_NUM = K
FILTER_SHAPE = (N, L)    # each filter multiplies x elementwise
D = N * L                # flattened length (32)
F_PAD = 128              # pad filter/output lane dim 12 -> 128 (lane-dense stores)

B_DEMO = 300             # batched demo size (not a multiple of 8 -> exercises padding)
B_DEMO_LARGE = 1024      # larger batch -> exercises multi-tile grid at bm=512


def _round_up(x, m):
    return ((x + m - 1) // m) * m


# --------------------------------------------------------------------------
# Filter preparation (hoisted out of the per-forward path -- compute once).
# --------------------------------------------------------------------------
def prepare_filters(filters):
    """Precompute the transposed / lane-padded filter matrices once.

    filters: (F,) + FILTER_SHAPE float32
    returns:
      filters_t_f32:  (D, F)   float32   -- for the fused single-x path
      filters_t_pad:  (D, 128) bfloat16  -- for the batched Pallas path
    """
    f_num = filters.shape[0]
    filters_t_f32 = filters.reshape(f_num, -1).T.astype(jnp.float32)       # (D, F)
    filters_t_pad = jnp.pad(filters_t_f32, ((0, 0), (0, F_PAD - f_num)))   # (D, 128)
    filters_t_pad = filters_t_pad.astype(jnp.bfloat16)
    return filters_t_f32, filters_t_pad


# --------------------------------------------------------------------------
# Single-x forward: NOT a Pallas kernel (per perf review -- 768 FLOPs,
# a dedicated custom call would cost 100-1000x the compute in dispatch/DMA).
# --------------------------------------------------------------------------
def custom_convolution_layer(x, filters_t_f32):
    """Forward of CustomConvolutionLayer for a single x.

    x:             FILTER_SHAPE float32
    filters_t_f32: (D, F) float32 (precomputed by prepare_filters)
    returns:       (F,)  float32  == stack_i( sum(x * f_i) / N )
    """
    return jnp.einsum("d,df->f", x.reshape(-1), filters_t_f32) * (1.0 / N)


# --------------------------------------------------------------------------
# Batched Pallas kernel: (bm, D) @ (D, 128) -> (bm, 128), scaled by 1/N.
# --------------------------------------------------------------------------
def _conv_matmul_kernel(x_ref, ft_ref, o_ref):
    """x_ref: (bm, D) bf16, ft_ref: (D, 128) bf16, o_ref: (bm, 128) f32."""
    o_ref[...] = jnp.dot(
        x_ref[...], ft_ref[...], preferred_element_type=jnp.float32
    ) * (1.0 / N)


@functools.partial(jax.jit, static_argnames=("f_num", "bm_target"))
def custom_convolution_layer_batched(xs, filters_t_pad, *, f_num=F_NUM, bm_target=512):
    """Batched forward: xs (B,) + FILTER_SHAPE -> (B, F) float32.

    filters_t_pad: (D, 128) bfloat16, precomputed once by prepare_filters.
    Tiles the batch axis (rows are independent -> "parallel"; v7x shards the
    grid over its 2 TensorCores).  Output is lane-dense (128 lanes) inside the
    kernel; padded columns/rows are sliced off before returning.
    """
    b = xs.shape[0]
    x_flat = xs.reshape(b, -1).astype(jnp.bfloat16)          # (B, D) bf16 (HBM-BW bound)
    d = x_flat.shape[1]
    f_pad = filters_t_pad.shape[1]

    # Row-tile size: multiple of 8, at most bm_target; pad B up to a multiple.
    bm = min(bm_target, _round_up(b, 8))
    b_pad = _round_up(b, bm)
    if b_pad != b:
        x_flat = jnp.pad(x_flat, ((0, b_pad - b), (0, 0)))
    grid = (b_pad // bm,)

    cost = pl.CostEstimate(
        flops=2 * b_pad * d * f_pad,
        transcendentals=0,
        bytes_accessed=(x_flat.size * 2) + (filters_t_pad.size * 2) + (b_pad * f_pad * 4),
    )

    out = pl.pallas_call(
        _conv_matmul_kernel,
        out_shape=jax.ShapeDtypeStruct((b_pad, f_pad), jnp.float32),
        grid=grid,
        in_specs=[
            pl.BlockSpec((bm, d), lambda i: (i, 0)),       # batch-tiled inputs
            pl.BlockSpec((d, f_pad), lambda i: (0, 0)),    # filters resident (untiled)
        ],
        out_specs=pl.BlockSpec((bm, f_pad), lambda i: (i, 0)),  # lane-dense output
        compiler_params=pltpu.CompilerParams(
            dimension_semantics=("parallel",),             # 2x on v7x (2 TC/chip)
        ),
        cost_estimate=cost,
    )(x_flat, filters_t_pad)

    # TODO(synk): advanced lane packing -- reshape xs to (B/4, 128) against a
    # 128x128 block-diagonal filter matrix to fill all 128 input lanes / MXU K.
    return out[:b, :f_num]


# --------------------------------------------------------------------------
# Helpers + references
# --------------------------------------------------------------------------
def generate_filter_combinations(key, f_num, shape, sigma):
    """Deterministic synthetic stand-in for generate_filter_combinations:
    Gaussian-distributed filters with std = filter_sigma."""
    return sigma * jax.random.normal(key, (f_num,) + shape, dtype=jnp.float32)


def _reference_single(x, filters):
    # pure-JAX transcription of the PyTorch forward (single x)
    return jnp.stack([jnp.sum(x * f) / N for f in filters])


def _reference_batched(xs, filters):
    return jnp.stack([_reference_single(x, filters) for x in xs])


if __name__ == "__main__":
    key = jax.random.PRNGKey(0)
    k_filt, k_x, k_xs, k_xl = jax.random.split(key, 4)

    filters = generate_filter_combinations(k_filt, F_NUM, FILTER_SHAPE, FILTER_SIGMA)
    filters_t_f32, filters_t_pad = prepare_filters(filters)   # precomputed once

    x = jax.random.normal(k_x, FILTER_SHAPE, dtype=jnp.float32)
    xs = jax.random.normal(k_xs, (B_DEMO,) + FILTER_SHAPE, dtype=jnp.float32)
    xs_large = jax.random.normal(k_xl, (B_DEMO_LARGE,) + FILTER_SHAPE, dtype=jnp.float32)

    # --- single-x forward (matches the PyTorch module exactly; fused einsum) ---
    out = jax.block_until_ready(custom_convolution_layer(x, filters_t_f32))
    ref = _reference_single(x, filters)
    assert out.shape == (F_NUM,), out.shape
    assert jnp.allclose(out, ref, atol=1e-5, rtol=1e-5), (out, ref)

    # --- batched Pallas forward, small tile target -> multi-step grid + padding ---
    out_b = jax.block_until_ready(
        custom_convolution_layer_batched(xs, filters_t_pad, bm_target=128)
    )
    assert out_b.shape == (B_DEMO, F_NUM), out_b.shape
    # apples-to-apples reference: same bf16-cast inputs, f32 accumulate
    xs_bf = xs.reshape(B_DEMO, -1).astype(jnp.bfloat16).astype(jnp.float32)
    ft_bf = filters_t_pad[:, :F_NUM].astype(jnp.float32)
    ref_b_bf16 = jnp.einsum("bd,df->bf", xs_bf, ft_bf) * (1.0 / N)
    assert jnp.allclose(out_b, ref_b_bf16, atol=1e-4, rtol=1e-4), "batched mismatch (bf16 ref)"
    # sanity vs the exact f32 module semantics (bf16 input quantization only)
    ref_b_f32 = _reference_batched(xs, filters)
    assert jnp.allclose(out_b, ref_b_f32, atol=5e-2, rtol=5e-2), "batched mismatch (f32 ref)"

    # --- batched Pallas forward at default 512-row tiles (2 grid steps) ---
    out_l = jax.block_until_ready(
        custom_convolution_layer_batched(xs_large, filters_t_pad)
    )
    assert out_l.shape == (B_DEMO_LARGE, F_NUM), out_l.shape
    xl_bf = xs_large.reshape(B_DEMO_LARGE, -1).astype(jnp.bfloat16).astype(jnp.float32)
    ref_l_bf16 = jnp.einsum("bd,df->bf", xl_bf, ft_bf) * (1.0 / N)
    assert jnp.allclose(out_l, ref_l_bf16, atol=1e-4, rtol=1e-4), "large-batch mismatch"

    print("KERNEL_OK")
</pallas_src>

<mosaic_0001>
module attributes {stable_mosaic.version = 11 : i64} {
  func.func @_conv_matmul_kernel(%arg0: i32, %arg1: memref<128x32xbf16, #tpu.memory_space<vmem>>, %arg2: memref<32x128xbf16, #tpu.memory_space<vmem>>, %arg3: memref<128x128xf32, #tpu.memory_space<vmem>>) attributes {dimension_semantics = [#tpu.dimension_semantics<parallel>], iteration_bounds = array<i64: 3>, scalar_prefetch = 0 : i64, scratch_operands = 0 : i64, tpu.core_type = #tpu.core_type<tc>, window_params = [{transform_indices = @transform_0, window_bounds = array<i64: 128, 32>}, {pipeline_mode = #tpu.pipeline_mode<synchronous>, transform_indices = @transform_1, window_bounds = array<i64: 32, 128>}, {transform_indices = @transform_2, window_bounds = array<i64: 128, 128>}]} {
    %c0 = arith.constant 0 : index
    %c0_0 = arith.constant 0 : index
    %0 = vector.load %arg1[%c0, %c0_0] : memref<128x32xbf16, #tpu.memory_space<vmem>>, vector<128x32xbf16>
    %c0_1 = arith.constant 0 : index
    %c0_2 = arith.constant 0 : index
    %1 = vector.load %arg2[%c0_1, %c0_2] : memref<32x128xbf16, #tpu.memory_space<vmem>>, vector<32x128xbf16>
    %cst = arith.constant dense<0.000000e+00> : vector<128x128xf32>
    %2 = tpu.matmul %0, %1, %cst {dimension_numbers = #tpu.dot_dimension_numbers<[1], [0], [0], [1], [0, 0, 1, 1], [], []>} : vector<128x32xbf16>, vector<32x128xbf16>, vector<128x128xf32> -> vector<128x128xf32>
    %cst_3 = arith.constant 2.500000e-01 : f32
    %3 = vector.broadcast %cst_3 : f32 to vector<128x128xf32>
    %4 = arith.mulf %2, %3 : vector<128x128xf32>
    %c0_4 = arith.constant 0 : index
    %c0_5 = arith.constant 0 : index
    %5 = vector.load %arg3[%c0_4, %c0_5] : memref<128x128xf32, #tpu.memory_space<vmem>>, vector<128x128xf32>
    tpu.vector_store %arg3[%c0_4, %c0_5], %4 {strides = array<i32>} : memref<128x128xf32, #tpu.memory_space<vmem>>, vector<128x128xf32>,
    return
  }
  func.func @transform_0(%arg0: i32) -> (i32, i32) {
    %c0_i32 = arith.constant 0 : i32
    %c0_i32_0 = arith.constant 0 : i32
    return %arg0, %c0_i32 : i32, i32
  }
  func.func @transform_1(%arg0: i32) -> (i32, i32) {
    %c0_i32 = arith.constant 0 : i32
    %c0_i32_0 = arith.constant 0 : i32
    %c0_i32_1 = arith.constant 0 : i32
    return %c0_i32, %c0_i32_0 : i32, i32
  }
  func.func @transform_2(%arg0: i32) -> (i32, i32) {
    %c0_i32 = arith.constant 0 : i32
    %c0_i32_0 = arith.constant 0 : i32
    return %arg0, %c0_i32 : i32, i32
  }
}

</mosaic_0001>

<bundles_post_ra>
// kernel: custom_convolution_layer_batched.1
= control target key start
LH: loop header
LB: loop body
LE: loop exit
PB: predicated region body
PF: predicated region fallthrough
CT: control target
= control target key end

     0   :  { %s488_s9 = smov 0   ;;  %s537_s0 = inlined_call_operand.vmem [shape: bf16[384,32], index: 0, kind: input, shape index: {}]   ;;  %s538_s1 = inlined_call_operand.vmem [shape: bf16[32,128], index: 1, kind: input, shape index: {}]   ;;  %s539_s2 = inlined_call_operand.vmem [shape: f32[384,128], index: 2, kind: output, shape index: {}]  }
   0x1 LB: > { %s382_s10 = sadd.s32 4294967295, %s471_s9   ;;  %p386_p0 = scmp.ge.s32.totalorder %s471_s9, 1  ;;  %s471_s9 = sphi %s488_s9, %s12_s9  }
   0x2   : > { %p113_p1 = scmp.lt.s32.totalorder %s471_s9, 4 }
   0x4   : > { %p114_p2 = pnand %p386_p0, %p113_p1 }
   0x5   : > { %s387_s13 = sshll.u32 (!%p114_p2), %s382_s10, 4 }
   0x6   : > { %117 = sbr.rel (%p114_p2) target bundleno = 180 (0xb4), region = 28  ;;  %p136_p3 = scmp.lt.s32.totalorder (!%p114_p2), %s387_s13, 47 }
   0xb   : > { %v450_v0 = vld [vmem:[%s538_s1 + $0x8] sm:$0xff]  ;;  %v449_v1 = vld [vmem:[%s538_s1] sm:$0xff]  ;;  %s541_s13 = smov (!%p136_p3, %s387_s13), 47  ;;  %vm220_vm0 = vcmask 261120  }
   0xc   : > { %251 = vmatpush.bf16.msra.mxu0 %v450_v0  ;;  %451 = vmatpush.bf16.msra.mxu1 %v450_v0  ;;  %s388_s16 = sshll.u32 %s541_s13, 2  ;;  %s390_s20 = sshll.u32 %s541_s13, 3 }
   0xd   : > { %452 = vmatpush.bf16.msra.mxu2 %v450_v0  ;;  %453 = vmatpush.bf16.msra.mxu3 %v450_v0  ;;  %s139_s19 = scalar_lea.vmem %s537_s0, %s388_s16  ;;  %s516_s23 = scalar_lea.vmem %s539_s2, %s390_s20 }
   0xe   : > { %v441_v2 = vld [vmem:[%s139_s19] sm:$0xff]  ;;  %v443_v3 = vld [vmem:[%s139_s19 + $0x10] sm:$0xff]  ;;  %v442_v6 = vld [vmem:[%s139_s19 + $0x8] sm:$0xff] }
   0xf   : > { %v445_v4 = vld [vmem:[%s139_s19 + $0x20] sm:$0xff]  ;;  %v447_v5 = vld [vmem:[%s139_s19 + $0x30] sm:$0xff]  ;;  %v444_v7 = vld [vmem:[%s139_s19 + $0x18] sm:$0xff] }
  0x10   : > { %252 = vmatpush.bf16.msra.mxu0 %v449_v1  ;;  %454 = vmatpush.bf16.msra.mxu1 %v449_v1  ;;  %v446_v8 = vld [vmem:[%s139_s19 + $0x28] sm:$0xff]  ;;  %v448_v9 = vld [vmem:[%s139_s19 + $0x38] sm:$0xff] }
  0x11   : > { %455 = vmatpush.bf16.msra.mxu2 %v449_v1  ;;  %456 = vmatpush.bf16.msra.mxu3 %v449_v1 }
  0x13   : > { %431 = vmatmul.msk.bf16.vlgmr.msra.gmra.mxu0 %vm220_vm0, %v441_v2  ;;  %433 = vmatmul.msk.bf16.vlgmr.msra.gmra.mxu1 %vm220_vm0, %v443_v3 }
  0x14   : > { %435 = vmatmul.msk.bf16.vlgmr.msra.gmra.mxu2 %vm220_vm0, %v445_v4  ;;  %437 = vmatmul.msk.bf16.vlgmr.msra.gmra.mxu3 %vm220_vm0, %v447_v5 }
  0x23   : > { %432 = vmatmul.msk.bf16.gmra.mxu0 %vm220_vm0, %v442_v6  ;;  %434 = vmatmul.msk.bf16.gmra.mxu1 %vm220_vm0, %v444_v7 }
  0x24   : > { %436 = vmatmul.msk.bf16.gmra.mxu2 %vm220_vm0, %v446_v8  ;;  %438 = vmatmul.msk.bf16.gmra.mxu3 %vm220_vm0, %v448_v9 }
  0x90   : > { %v254_v10 = vpop.f32.mrf.mxu0  ;;  %v264_v11 = vpop.f32.mrf.mxu1 }
  0x91   : > { %v294_v12 = vmul.f32 0.25, %v254_v10  ;;  %v298_v13 = vmul.f32 0.25, %v264_v11 }
  0x93   : > { %310 = vst [vmem:[%s516_s23] sm:$0xff] %v294_v12 }
  0x94   : > { %314 = vst [vmem:[%s516_s23 + $0x20] sm:$0xff] %v298_v13 }
  0x97   : > { %v274_v14 = vpop.f32.mrf.mxu2  ;;  %v284_v15 = vpop.f32.mrf.mxu3 }
  0x98   : > { %v302_v16 = vmul.f32 0.25, %v274_v14  ;;  %v306_v17 = vmul.f32 0.25, %v284_v15  ;;  %v256_v18 = vpop.f32.mrf.mxu0  ;;  %v266_v19 = vpop.f32.mrf.mxu1 }
  0x99   : > { %v295_v20 = vmul.f32 0.25, %v256_v18  ;;  %v299_v21 = vmul.f32 0.25, %v266_v19 }
  0x9a   : > { %318 = vst [vmem:[%s516_s23 + $0x40] sm:$0xff] %v302_v16 }
  0x9b   : > { %322 = vst [vmem:[%s516_s23 + $0x60] sm:$0xff] %v306_v17 }
  0x9c   : > { %311 = vst [vmem:[%s516_s23 + $0x8] sm:$0xff] %v295_v20 }
  0x9d   : > { %315 = vst [vmem:[%s516_s23 + $0x28] sm:$0xff] %v299_v21 }
  0x9f   : > { %v276_v22 = vpop.f32.mrf.mxu2  ;;  %v286_v23 = vpop.f32.mrf.mxu3 }
  0xa0   : > { %v303_v24 = vmul.f32 0.25, %v276_v22  ;;  %v307_v25 = vmul.f32 0.25, %v286_v23  ;;  %v259_v26 = vpop.f32.mrf.mxu0  ;;  %v269_v27 = vpop.f32.mrf.mxu1 }
  0xa1   : > { %v296_v28 = vmul.f32 0.25, %v259_v26  ;;  %v300_v29 = vmul.f32 0.25, %v269_v27 }
  0xa2   : > { %319 = vst [vmem:[%s516_s23 + $0x48] sm:$0xff] %v303_v24 }
  0xa3   : > { %323 = vst [vmem:[%s516_s23 + $0x68] sm:$0xff] %v307_v25 }
  0xa4   : > { %312 = vst [vmem:[%s516_s23 + $0x10] sm:$0xff] %v296_v28 }
  0xa5   : > { %316 = vst [vmem:[%s516_s23 + $0x30] sm:$0xff] %v300_v29 }
  0xa7   : > { %v279_v30 = vpop.f32.mrf.mxu2  ;;  %v289_v31 = vpop.f32.mrf.mxu3 }
  0xa8   : > { %v304_v32 = vmul.f32 0.25, %v279_v30  ;;  %v308_v33 = vmul.f32 0.25, %v289_v31  ;;  %v261_v34 = vpop.f32.mrf.mxu0  ;;  %v271_v35 = vpop.f32.mrf.mxu1 }
  0xa9   : > { %v297_v36 = vmul.f32 0.25, %v261_v34  ;;  %v301_v37 = vmul.f32 0.25, %v271_v35 }
  0xaa   : > { %320 = vst [vmem:[%s516_s23 + $0x50] sm:$0xff] %v304_v32 }
  0xab   : > { %324 = vst [vmem:[%s516_s23 + $0x70] sm:$0xff] %v308_v33 }
  0xac   : > { %313 = vst [vmem:[%s516_s23 + $0x18] sm:$0xff] %v297_v36 }
  0xad   : > { %317 = vst [vmem:[%s516_s23 + $0x38] sm:$0xff] %v301_v37 }
  0xaf   : > { %v281_v38 = vpop.f32.mrf.mxu2  ;;  %v291_v39 = vpop.f32.mrf.mxu3 }
  0xb0   : > { %v305_v40 = vmul.f32 0.25, %v281_v38  ;;  %v309_v41 = vmul.f32 0.25, %v291_v39 }
  0xb2   : > { %321 = vst [vmem:[%s516_s23 + $0x58] sm:$0xff] %v305_v40 }
  0xb3   : > { %325 = vst [vmem:[%s516_s23 + $0x78] sm:$0xff] %v309_v41 }
  0xb4 PF: > { %s12_s9 = sadd.s32 1, %s471_s9  }
  0xb5   : > { %p9_p4 = scmp.ge.s32.totalorder %s12_s9, 5  }
  0xb7   :  { %11 = sbr.rel (!%p9_p4) target bundleno = 1 (0x1), region = 58 }

</bundles_post_ra>
